<compile_context>
chip_gen: v6e
topology: v6e:2x2x1
jax: 0.10.0
libtpu: 0.0.40
codegen_flags: <defaults>
</compile_context>

<pallas_src>
import numpy as np
import jax
import jax.numpy as jnp
from jax.experimental import pallas as pl
from jax.experimental.pallas import tpu as pltpu

# Deterministic synthetic stand-in for the module-level CLOUD_STDS constant (len 3 = xyz).
CLOUD_STDS = (1.1, 0.9, 1.3)


def _round_up(x, m):
    return ((x + m - 1) // m) * m


def _build_constants(d_model, temperature, orig_resolution):
    """Precompute the scaled one-hot mixing matrix W and the sin/cos phase bias."""
    enc_dim = d_model // 3 // 2 // 8
    pad = d_model - enc_dim * 3 * 2 * 8
    d_pad = _round_up(max(d_model, 128), 128)          # lane-dense output width
    bin_size = orig_resolution / np.array(CLOUD_STDS, dtype=np.float32)          # (3,)
    dim_t = np.float32(temperature) ** (
        np.arange(enc_dim, dtype=np.float32) / np.float32(max(enc_dim, 1)))      # (enc_dim,)

    W = np.zeros((8 * 3, d_pad), dtype=np.float32)
    bias = np.zeros((1, d_pad), dtype=np.float32)      # pi/2 on cos columns, 0 elsewhere
    for p in range(8):
        for c in range(3):
            for f in range(enc_dim):
                scale = np.float32(1.0) / (bin_size[c] * dim_t[f])
                base = pad + ((p * 3 + c) * enc_dim + f) * 2
                W[p * 3 + c, base + 0] = scale                      # sin slot
                W[p * 3 + c, base + 1] = scale                      # cos slot
                bias[0, base + 1] = np.float32(np.pi / 2.0)         # sin(x+pi/2)=cos(x)
    return jnp.asarray(W), jnp.asarray(bias), d_pad


def _pe_kernel(x_ref, w_ref, bias_ref, o_ref):
    # (tile_rows, 24) @ (24, d_pad) -> phases; single sin (cos folded into bias).
    pos = jnp.dot(x_ref[...], w_ref[...], preferred_element_type=jnp.float32)
    o_ref[...] = jnp.sin(pos + bias_ref[...]).astype(o_ref.dtype)


def fixed_positional_encoder(x, d_model, temperature, orig_resolution,
                             tile_rows=None, out_dtype=jnp.float32):
    B, N, P, C = x.shape
    assert P == 8 and C == 3, "expected [B, N, 8, 3] point-cloud layout"
    # Note: for d_model < 48, enc_dim == 0 and the output is all zeros (matches
    # the reference formula, but is almost certainly a config error upstream).
    W, bias, d_pad = _build_constants(d_model, temperature, orig_resolution)

    rows = B * N
    if tile_rows is None:
        # ~2 MiB f32 output tile per grid step (measured ~85% of HBM roofline for
        # mem-bound kernels). Double-buffered in/out tiles stay far below the
        # 32 MiB scoped-VMEM default on every generation (incl. v7x's 64 MiB VMEM).
        tile_rows = (2 * 1024 * 1024) // (d_pad * 4)
        tile_rows = max(8, min(8192, (tile_rows // 8) * 8))
    # Don't over-pad tiny inputs: shrink the tile to the (8-rounded) row count.
    tile_rows = max(8, (min(tile_rows, _round_up(rows, 8)) // 8) * 8)

    rows_pad = _round_up(rows, tile_rows)
    x_flat = x.reshape(rows, P * C).astype(jnp.float32)
    if rows_pad != rows:
        x_flat = jnp.pad(x_flat, ((0, rows_pad - rows), (0, 0)))

    out = pl.pallas_call(
        _pe_kernel,
        out_shape=jax.ShapeDtypeStruct((rows_pad, d_pad), out_dtype),
        grid_spec=pltpu.PrefetchScalarGridSpec(
            num_scalar_prefetch=0,
            grid=(rows_pad // tile_rows,),
            in_specs=[
                pl.BlockSpec((tile_rows, P * C), lambda i: (i, 0)),
                pl.BlockSpec((P * C, d_pad), lambda i: (0, 0)),
                pl.BlockSpec((1, d_pad), lambda i: (0, 0)),
            ],
            out_specs=pl.BlockSpec((tile_rows, d_pad), lambda i: (i, 0)),
        ),
        compiler_params=pltpu.CompilerParams(
            dimension_semantics=("parallel",)),   # row axis shards across v7x's 2 TCs
    )(x_flat, W, bias)

    out = out[:rows, :d_model]
    return out.reshape(B, N, d_model)


def _ref_forward(x, d_model, temperature, orig_resolution):
    """Pure-JAX transcription of the PyTorch forward, for verification."""
    enc_dim = d_model // 3 // 2 // 8
    pad = d_model - enc_dim * 3 * 2 * 8
    bin_size = jnp.asarray(orig_resolution / np.array(CLOUD_STDS, dtype=np.float32))
    xb = x / bin_size
    dim_t = jnp.float32(temperature) ** (
        jnp.arange(enc_dim, dtype=jnp.float32) / jnp.float32(enc_dim))
    pos = xb[:, :, :, :, None] / dim_t                              # [B,N,8,3,enc_dim]
    pos = jnp.stack((jnp.sin(pos), jnp.cos(pos)), axis=5)           # [B,N,8,3,enc_dim,2]
    pos = pos.reshape(x.shape[0], x.shape[1], -1)                   # flatten(2)
    return jnp.pad(pos, ((0, 0), (0, 0), (pad, 0)))                 # ZeroPad2d((pad,0,0,0))


if __name__ == "__main__":
    d_model = 128
    temperature = 10000.0
    orig_resolution = 0.05
    B, N = 2, 16

    key = jax.random.PRNGKey(0)
    x = jax.random.normal(key, (B, N, 8, 3), dtype=jnp.float32)

    out = fixed_positional_encoder(x, d_model, temperature, orig_resolution)
    out = jax.block_until_ready(out)

    ref = _ref_forward(x, d_model, temperature, orig_resolution)
    assert out.shape == (B, N, d_model)
    assert bool(jnp.allclose(out, ref, atol=1e-4, rtol=1e-4))
    print("KERNEL_OK")
</pallas_src>

<mosaic_0001>
module attributes {stable_mosaic.version = 11 : i64} {
  func.func @_pe_kernel(%arg0: i32, %arg1: memref<32x24xf32, #tpu.memory_space<vmem>>, %arg2: memref<24x128xf32, #tpu.memory_space<vmem>>, %arg3: memref<1x128xf32, #tpu.memory_space<vmem>>, %arg4: memref<32x128xf32, #tpu.memory_space<vmem>>) attributes {dimension_semantics = [#tpu.dimension_semantics<parallel>], iteration_bounds = array<i64: 1>, scalar_prefetch = 0 : i64, scratch_operands = 0 : i64, tpu.core_type = #tpu.core_type<tc>, window_params = [{transform_indices = @transform_0, window_bounds = array<i64: 32, 24>}, {pipeline_mode = #tpu.pipeline_mode<synchronous>, transform_indices = @transform_1, window_bounds = array<i64: 24, 128>}, {pipeline_mode = #tpu.pipeline_mode<synchronous>, transform_indices = @transform_2, window_bounds = array<i64: 1, 128>}, {transform_indices = @transform_3, window_bounds = array<i64: 32, 128>}]} {
    %c0 = arith.constant 0 : index
    %c0_0 = arith.constant 0 : index
    %0 = vector.load %arg1[%c0, %c0_0] : memref<32x24xf32, #tpu.memory_space<vmem>>, vector<32x24xf32>
    %c0_1 = arith.constant 0 : index
    %c0_2 = arith.constant 0 : index
    %1 = vector.load %arg2[%c0_1, %c0_2] : memref<24x128xf32, #tpu.memory_space<vmem>>, vector<24x128xf32>
    %cst = arith.constant dense<0.000000e+00> : vector<32x128xf32>
    %2 = tpu.matmul %0, %1, %cst {dimension_numbers = #tpu.dot_dimension_numbers<[1], [0], [0], [1], [0, 0, 1, 1], [], []>} : vector<32x24xf32>, vector<24x128xf32>, vector<32x128xf32> -> vector<32x128xf32>
    %c0_3 = arith.constant 0 : index
    %c0_4 = arith.constant 0 : index
    %3 = vector.load %arg3[%c0_3, %c0_4] : memref<1x128xf32, #tpu.memory_space<vmem>>, vector<1x128xf32>
    %4 = vector.broadcast %3 : vector<1x128xf32> to vector<32x128xf32>
    %5 = arith.addf %2, %4 : vector<32x128xf32>
    %6 = math.sin %5 : vector<32x128xf32>
    %c0_5 = arith.constant 0 : index
    %c0_6 = arith.constant 0 : index
    %7 = vector.load %arg4[%c0_5, %c0_6] : memref<32x128xf32, #tpu.memory_space<vmem>>, vector<32x128xf32>
    tpu.vector_store %arg4[%c0_5, %c0_6], %6 {strides = array<i32>} : memref<32x128xf32, #tpu.memory_space<vmem>>, vector<32x128xf32>,
    return
  }
  func.func @transform_0(%arg0: i32) -> (i32, i32) {
    %c0_i32 = arith.constant 0 : i32
    %c0_i32_0 = arith.constant 0 : i32
    return %arg0, %c0_i32 : i32, i32
  }
  func.func @transform_1(%arg0: i32) -> (i32, i32) {
    %c0_i32 = arith.constant 0 : i32
    %c0_i32_0 = arith.constant 0 : i32
    %c0_i32_1 = arith.constant 0 : i32
    return %c0_i32, %c0_i32_0 : i32, i32
  }
  func.func @transform_2(%arg0: i32) -> (i32, i32) {
    %c0_i32 = arith.constant 0 : i32
    %c0_i32_0 = arith.constant 0 : i32
    %c0_i32_1 = arith.constant 0 : i32
    return %c0_i32, %c0_i32_0 : i32, i32
  }
  func.func @transform_3(%arg0: i32) -> (i32, i32) {
    %c0_i32 = arith.constant 0 : i32
    %c0_i32_0 = arith.constant 0 : i32
    return %arg0, %c0_i32 : i32, i32
  }
}

</mosaic_0001>

<bundles_post_ra>
// kernel: tpu_custom_call.1
= control target key start
LH: loop header
LB: loop body
LE: loop exit
PB: predicated region body
PF: predicated region fallthrough
CT: control target
= control target key end

     0   :  { %s985_s0 = inlined_call_operand.vmem [shape: f32[32,24], index: 0, kind: input, shape index: {}]   ;;  %s986_s1 = inlined_call_operand.vmem [shape: f32[24,128], index: 1, kind: input, shape index: {}]   ;;  %s987_s2 = inlined_call_operand.vmem [shape: f32[1,128], index: 2, kind: input, shape index: {}]   ;;  %s988_s3 = inlined_call_operand.hbm [shape: f32[32,128], index: 3, kind: output, shape index: {}]  }
   0x1   :  { %v21_v0 = vld [vmem:[%s986_s1 + $0x10] sm:$0xff]  ;;  %v20_v1 = vld [vmem:[%s986_s1 + $0x8] sm:$0xff]  ;;  %v19_v2 = vld [vmem:[%s986_s1] sm:$0xff] }
   0x2   :  { %591 = vmatprep.subr.mxu0 %v21_v0  ;;  %603 = vmatprep.subr.mxu1 %v21_v0 }
   0x3   :  { %592 = vmatpush3.msra.mxu0 %v21_v0  ;;  %606 = vmatpush3.msra.mxu1 %v21_v0 }
   0x4   :  { %8 = vsyncpa [#allocation3], 0  ;;  %593 = vmatprep.subr.mxu0 %v20_v1  ;;  %604 = vmatprep.subr.mxu1 %v20_v1  ;;  %v15_v3 = vld [vmem:[%s985_s0] sm:$0xff]  ;;  %vm29_vm0 = vcmask 195584   ;;  %v17_v4 = vld [vmem:[%s985_s0 + $0x10] sm:$0xff] }
   0x5   :  { %594 = vmatpush3.msra.mxu0 %v20_v1  ;;  %607 = vmatpush3.msra.mxu1 %v20_v1  ;;  %v16_v5 = vld [vmem:[%s985_s0 + $0x8] sm:$0xff]  ;;  %v18_v6 = vld [vmem:[%s985_s0 + $0x18] sm:$0xff]  ;;  %v725_v7 = vld [vmem:[%s987_s2] ss:$0 sm:$0xff]  ;;  %v672_v41 = vmov 683565275  }
   0x6   :  { %595 = vmatprep.subr.mxu0 %v19_v2  ;;  %605 = vmatprep.subr.mxu1 %v19_v2  ;;  %v673_v45 = vmov 2475754826   ;;  %v674_v47 = vmov 2131351028   ;;  %v675_v49 = vmov 2102212464  }
   0x7   :  { %596 = vmatpush3.msra.mxu0 %v19_v2  ;;  %608 = vmatpush3.msra.mxu1 %v19_v2  ;;  %v676_v51 = vmov 920167782   ;;  %v677_v58 = vmov 1326507024   ;;  %s678_s0 = smov [#allocation2]  }
   0x8   :  { %597 = vmatprep.mubr.msk.f32.mxu0 %vm29_vm0, %v15_v3  ;;  %600 = vmatprep.mubr.msk.f32.mxu1 %vm29_vm0, %v17_v4  ;;  %s552_s2 = sshll.u32 %s678_s0, 4  ;;  %s553_s2 = int_to_ptr.vmem [resolvable:$true] %s552_s2 }
   0x9   :  { %598 = vmatmul.mubr.msk.f32.vlgmr.msra.gmra.mxu0 %vm29_vm0, %v16_v5  ;;  %601 = vmatmul.mubr.msk.f32.vlgmr.msra.gmra.mxu1 %vm29_vm0, %v18_v6  ;;  %s650_s27 = scalar_lea.vmem %s553_s2, 512  ;;  %p655_p1 = scmp.lt.s32.totalorder %s553_s2, %s553_s2 }
   0xa   :  { %p651_p0 = scmp.ne.s32.totalorder %s553_s2, %s650_s27  ;;  %p656_p2 = scmp.lt.s32.totalorder %s650_s27, %s650_s27 }
   0xc   :  { %p657_p3 = por %p656_p2, %p655_p1 }
   0xe   :  { %p658_p4 = pnand %p657_p3, %p651_p0 }
  0xc9   :  { %v599_v8 = vpop.f32.mrf.mxu0  ;;  %v602_v9 = vpop.f32.mrf.mxu1 }
  0xca   :  { %v728_v10 = vadd.f32 %v599_v8, %v725_v7  ;;  %v731_v11 = vadd.f32 %v602_v9, %v725_v7 }
  0xcb   :  { %v108_v12 = vpop.f32.mrf.mxu0 }
  0xcc   :  { %v231_v13 = vand.u32 2147483647, %v728_v10  ;;  %v234_v14 = vand.u32 2139095040, %v728_v10  ;;  %v439_v15 = vand.u32 2147483647, %v731_v11  ;;  %v442_v16 = vand.u32 2139095040, %v731_v11 }
  0xcd   :  { %v740_v19 = vadd.f32 %v725_v7, %v108_v12  ;;  %vm233_vm14 = vcmp.lt.s32.totalorder %v728_v10, 0 }
  0xce   :  { %v235_v17 = vshrl.u32 %v234_v14, 23  ;;  %v238_v18 = vand.u32 8388607, %v231_v13  ;;  %v443_v20 = vshrl.u32 %v442_v16, 23  ;;  %v446_v21 = vand.u32 8388607, %v439_v15 }
  0xcf   :  { %v130_v24 = vand.u32 2139095040, %v740_v19  ;;  %v127_v29 = vand.u32 2147483647, %v740_v19  ;;  %vm847_vm15 = vcmp.le.f32.partialorder %v231_v13, 0.7853982 }
  0xd0   :  { %v572_v22 = vadd.s32 4294967169, %v235_v17  ;;  %v580_v23 = vadd.s32 4294967169, %v443_v20  ;;  %v239_v25 = vor.u32 8388608, %v238_v18  ;;  %v447_v27 = vor.u32 8388608, %v446_v21 }
  0xd1   :  { %v131_v30 = vshrl.u32 %v130_v24, 23  ;;  %v754_v39 = vand.u32 8388607, %v127_v29 }
  0xd2   :  { %v241_v26 = vadd.s32 1, %v572_v22  ;;  %v449_v28 = vadd.s32 1, %v580_v23  ;;  %v746_v36 = vshll.u32 %v239_v25, 8  ;;  %v750_v38 = vshll.u32 %v447_v27, 8 }
  0xd3   :  { %v568_v32 = vadd.s32 4294967169, %v131_v30 }
  0xd4   :  { %vm242_vm1 = vcmp.gt.s32.totalorder %v241_v26, 0  ;;  %vm450_vm2 = vcmp.gt.s32.totalorder %v449_v28, 0 }
  0xd5   :  { %v243_v31 = vsel %vm242_vm1, %v241_v26, 0  ;;  %v451_v35 = vsel %vm450_vm2, %v449_v28, 0  ;;  %v757_v44 = vadd.s32 1, %v568_v32 }
  0xd6   :  { %v244_v33 = vshrl.u32 %v243_v31, 5  ;;  %v245_v34 = vand.u32 31, %v243_v31  ;;  %v748_v37 = vshrl.u32 %v451_v35, 5  ;;  %v453_v43 = vand.u32 31, %v451_v35 }
  0xd7   :  { %vm138_vm12 = vcmp.gt.s32.totalorder %v757_v44, 0 }
  0xd8   :  { %v246_v40 = vsub.s32 32, %v245_v34  ;;  %v248_v42 = vshll.u32 %v672_v41, %v245_v34  ;;  %v251_v46 = vshll.u32 %v673_v45, %v245_v34  ;;  %v254_v48 = vshll.u32 %v674_v47, %v245_v34 }
  0xd9   :  { %v257_v50 = vshll.u32 %v675_v49, %v245_v34  ;;  %v260_v52 = vshll.u32 %v676_v51, %v245_v34  ;;  %vm263_vm3 = vcmp.lt.s32.totalorder %v244_v33, 1  ;;  %vm264_vm4 = vcmp.lt.s32.totalorder %v244_v33, 2 }
  0xda   :  { %v249_v53 = vshrl.u32 %v673_v45, %v246_v40  ;;  %v252_v54 = vshrl.u32 %v674_v47, %v246_v40  ;;  %v255_v55 = vshrl.u32 %v675_v49, %v246_v40  ;;  %v247_v56 = vshrl.u32 %v672_v41, %v246_v40 }
  0xdb   :  { %v258_v57 = vshrl.u32 %v676_v51, %v246_v40  ;;  %v261_v59 = vshrl.u32 %v677_v58, %v246_v40  ;;  %v454_v63 = vsub.s32 32, %v453_v43  ;;  %vm265_vm5 = vcmp.lt.s32.totalorder %v244_v33, 3 }
  0xdc   :  { %v250_v60 = vor.u32 %v249_v53, %v248_v42  ;;  %v253_v61 = vor.u32 %v252_v54, %v251_v46  ;;  %v256_v62 = vor.u32 %v255_v55, %v254_v48  ;;  %vm266_vm6 = vcmp.lt.s32.totalorder %v244_v33, 4 }
  0xdd   :  { %v259_v0 = vor.u32 %v258_v57, %v257_v50  ;;  %v262_v1 = vor.u32 %v261_v59, %v260_v52  ;;  %v456_v12 = vshll.u32 %v672_v41, %v453_v43  ;;  %v457_v17 = vshrl.u32 %v673_v45, %v454_v63 }
  0xde   :  { %v267_v2 = vsel %vm263_vm3, %v247_v56, %v250_v60  ;;  %v268_v3 = vsel %vm266_vm6, %v256_v62, 2102212464  ;;  %v271_v4 = vsel %vm263_vm3, %v250_v60, %v253_v61  ;;  %v275_v5 = vsel %vm263_vm3, %v253_v61, %v256_v62 }
  0xdf   :  { %v269_v6 = vsel %vm265_vm5, %v253_v61, %v268_v3  ;;  %v272_v8 = vsel %vm266_vm6, %v259_v0, 920167782  ;;  %v276_v9 = vsel %vm266_vm6, %v262_v1, 1326507024  ;;  %v459_v18 = vshll.u32 %v673_v45, %v453_v43 }
  0xe0   :  { %v273_v14 = vsel %vm265_vm5, %v256_v62, %v272_v8  ;;  %v277_v16 = vsel %vm265_vm5, %v259_v0, %v276_v9  ;;  %v270_v20 = vsel %vm264_vm4, %v267_v2, %v269_v6  ;;  %v460_v23 = vshrl.u32 %v674_v47, %v454_v63  ;;  %v118_v62 = vpop.f32.mrf.mxu1 }
  0xe1   :  { %v274_v21 = vsel %vm264_vm4, %v271_v4, %v273_v14  ;;  %v278_v22 = vsel %vm264_vm4, %v275_v5, %v277_v16  ;;  %v458_v28 = vor.u32 %v457_v17, %v456_v12  ;;  %v462_v31 = vshll.u32 %v674_v47, %v453_v43 }
  0xe2   :  { %v780_v24 = vmul.u32.u64.low %v746_v36, %v278_v22  ;;  %v781_v25 = vmul.u32.u64.high %v746_v36, %v278_v22, %v780_v24  ;;  %v784_v26 = vmul.u32.u64.low %v746_v36, %v274_v21  ;;  %v785_v27 = vmul.u32.u64.high %v746_v36, %v274_v21, %v784_v26 }
  0xe3   :  { %v461_v30 = vor.u32 %v460_v23, %v459_v18  ;;  %v463_v32 = vshrl.u32 %v675_v49, %v454_v63  ;;  %v455_v33 = vshrl.u32 %v672_v41, %v454_v63  ;;  %v465_v34 = vshll.u32 %v675_v49, %v453_v43 }
  0xe4   :  { %v466_v35 = vshrl.u32 %v676_v51, %v454_v63  ;;  %v469_v40 = vshrl.u32 %v677_v58, %v454_v63  ;;  %v286_v42 = vmul.u32 %v746_v36, %v270_v20  ;;  %v468_v48 = vshll.u32 %v676_v51, %v453_v43 }
  0xe5   :  { %v464_v46 = vor.u32 %v463_v32, %v462_v31  ;;  %vm471_vm7 = vcmp.lt.s32.totalorder %v748_v37, 1  ;;  %vm288_vm8 = vc.u32 %v781_v25, %v784_v26  ;;  %v289_v50 = vadd.s32 1, %v785_v27 }
  0xe6   :  { %v467_v52 = vor.u32 %v466_v35, %v465_v34  ;;  %vm472_vm9 = vcmp.lt.s32.totalorder %v748_v37, 2  ;;  %v470_v53 = vor.u32 %v469_v40, %v468_v48  ;;  %vm473_vm10 = vcmp.lt.s32.totalorder %v748_v37, 3 }
  0xe7   :  { %vm474_vm11 = vcmp.lt.s32.totalorder %v748_v37, 4  ;;  %v479_v54 = vsel %vm471_vm7, %v458_v28, %v461_v30  ;;  %v290_v36 = vsel %vm288_vm8, %v289_v50, %v785_v27  ;;  %v483_v56 = vsel %vm471_vm7, %v461_v30, %v464_v46 }
  0xe8   :  { %v476_v55 = vsel %vm474_vm11, %v464_v46, 2102212464  ;;  %v480_v43 = vsel %vm474_vm11, %v467_v52, 920167782  ;;  %v291_v57 = vadd.s32 %v290_v36, %v286_v42  ;;  %v475_v59 = vsel %vm471_vm7, %v455_v33, %v458_v28 }
  0xe9   :  { %v481_v60 = vsel %vm473_vm10, %v464_v46, %v480_v43  ;;  %v484_v61 = vsel %vm474_vm11, %v470_v53, 1326507024  ;;  %v477_v63 = vsel %vm473_vm10, %v461_v30, %v476_v55  ;;  %v139_v9 = vsel %vm138_vm12, %v757_v44, 0 }
  0xea   :  { %v482_v0 = vsel %vm472_vm9, %v479_v54, %v481_v60  ;;  %v485_v1 = vsel %vm473_vm10, %v467_v52, %v484_v61  ;;  %v292_v2 = vadd.s32 536870912, %v291_v57  ;;  %v820_v12 = vadd.f32 %v725_v7, %v118_v62 }
  0xeb   :  { %v486_v3 = vsel %vm472_vm9, %v483_v56, %v485_v1  ;;  %v810_v4 = vmul.u32.u64.low %v750_v38, %v482_v0  ;;  %v811_v5 = vmul.u32.u64.high %v750_v38, %v482_v0, %v810_v4  ;;  %v478_v16 = vsel %vm472_vm9, %v475_v59, %v477_v63 }
  0xec   :  { %v815_v6 = vmul.u32.u64.low %v750_v38, %v486_v3  ;;  %v816_v8 = vmul.u32.u64.high %v750_v38, %v486_v3, %v815_v6  ;;  %v293_v14 = vshrl.u32 %v292_v2, 30  ;;  %v141_v17 = vand.u32 31, %v139_v9 }
  0xed   :  { %v497_v20 = vadd.s32 1, %v811_v5  ;;  %v135_v21 = vor.u32 8388608, %v754_v39  ;;  %v494_v22 = vmul.u32 %v750_v38, %v478_v16  ;;  %v338_v44 = vand.u32 2139095040, %v820_v12 }
  0xee   :  { %v294_v18 = vshll.u32 %v293_v14, 30  ;;  %vm496_vm13 = vc.u32 %v816_v8, %v810_v4  ;;  %v142_v23 = vsub.s32 32, %v141_v17  ;;  %v140_v33 = vshrl.u32 %v139_v9, 5 }
  0xef   :  { %v498_v24 = vsel %vm496_vm13, %v497_v20, %v811_v5  ;;  %v832_v28 = vshll.u32 %v135_v21, 8  ;;  %v339_v31 = vshrl.u32 %v338_v44, 23  ;;  %v317_v40 = vsub.s32 4, %v293_v14 }
  0xf0   :  { %v295_v7 = vsub.s32 %v291_v57, %v294_v18  ;;  %v499_v27 = vadd.s32 %v498_v24, %v494_v22  ;;  %v145_v39 = vshrl.u32 %v673_v45, %v142_v23  ;;  %v148_v38 = vshrl.u32 %v674_v47, %v142_v23 }
  0xf1   :  { %v151_v34 = vshrl.u32 %v675_v49, %v142_v23  ;;  %v154_v35 = vshrl.u32 %v676_v51, %v142_v23  ;;  %v144_v46 = vshll.u32 %v672_v41, %v141_v17  ;;  %v147_v48 = vshll.u32 %v673_v45, %v141_v17 }
  0xf2   :  { %v297_v37 = vsub.s32 0, %v295_v7  ;;  %v500_v30 = vadd.s32 536870912, %v499_v27  ;;  %v150_v52 = vshll.u32 %v674_v47, %v141_v17  ;;  %v153_v53 = vshll.u32 %v675_v49, %v141_v17 }
  0xf3   :  { %v157_v54 = vshrl.u32 %v677_v58, %v142_v23  ;;  %v287_v55 = vadd.s32 %v784_v26, %v781_v25  ;;  %v146_v56 = vor.u32 %v145_v39, %v144_v46  ;;  %v149_v57 = vor.u32 %v148_v38, %v147_v48 }
  0xf4   :  { %v573_v32 = vmin.u32 %v297_v37, %v295_v7  ;;  %v838_v42 = vshrl.u32 %v500_v30, 30  ;;  %v152_v60 = vor.u32 %v151_v34, %v150_v52  ;;  %v155_v61 = vor.u32 %v154_v35, %v153_v53 }
  0xf5   :  { %v156_v62 = vshll.u32 %v676_v51, %v141_v17  ;;  %v318_v63 = vsel %vm233_vm14, %v317_v40, %v293_v14  ;;  %v143_v13 = vshrl.u32 %v672_v41, %v142_v23  ;;  %vm159_vm0 = vcmp.lt.s32.totalorder %v140_v33, 1 }
  0xf6   :  { %v299_v50 = vclz %v573_v32  ;;  %v502_v43 = vshll.u32 %v838_v42, 30  ;;  %vm160_vm2 = vcmp.lt.s32.totalorder %v140_v33, 2  ;;  %vm161_vm3 = vcmp.lt.s32.totalorder %v140_v33, 3 }
  0xf7   :  { %v158_v1 = vor.u32 %v157_v54, %v156_v62  ;;  %vm162_vm4 = vcmp.lt.s32.totalorder %v140_v33, 4  ;;  %v167_v2 = vsel %vm159_vm0, %v146_v56, %v149_v57  ;;  %v171_v18 = vsel %vm159_vm0, %v149_v57, %v152_v60 }
  0xf8   :  { %v574_v59 = vadd.s32 4294967294, %v299_v50  ;;  %v857_v0 = vsub.s32 %v499_v27, %v502_v43  ;;  %v164_v6 = vsel %vm162_vm4, %v152_v60, 2102212464  ;;  %v168_v9 = vsel %vm162_vm4, %v155_v61, 920167782 }
  0xf9   :  { %v169_v17 = vsel %vm161_vm3, %v152_v60, %v168_v9  ;;  %v172_v23 = vsel %vm162_vm4, %v158_v1, 1326507024  ;;  %v163_v24 = vsel %vm159_vm0, %v143_v13, %v146_v56  ;;  %v165_v27 = vsel %vm161_vm3, %v149_v57, %v164_v6 }
  0xfa   :  { %vm575_vm1 = vcmp.lt.s32.totalorder %v574_v59, 0  ;;  %v505_v26 = vsub.s32 0, %v857_v0  ;;  %v170_v22 = vsel %vm160_vm2, %v167_v2, %v169_v17  ;;  %v576_v37 = vadd.s32 4294967169, %v339_v31 }
  0xfb   :  { %v302_v25 = vsel %vm575_vm1, 0, %v574_v59  ;;  %v173_v38 = vsel %vm161_vm3, %v155_v61, %v172_v23  ;;  %v873_v35 = vmul.u32.u64.low %v832_v28, %v170_v22  ;;  %v874_v40 = vmul.u32.u64.high %v832_v28, %v170_v22, %v873_v35 }
  0xfc   :  { %v303_v3 = vsub.s32 32, %v302_v25  ;;  %v307_v5 = vsub.s32 4294967266, %v302_v25  ;;  %v304_v14 = vshll.u32 %v295_v7, %v302_v25  ;;  %v581_v16 = vmin.u32 %v505_v26, %v857_v0 }
  0xfd   :  { %v320_v7 = vsel %vm847_vm15, 0, %v318_v63  ;;  %v174_v34 = vsel %vm160_vm2, %v171_v18, %v173_v38  ;;  %v166_v48 = vsel %vm160_vm2, %v163_v24, %v165_v27  ;;  %v495_v52 = vadd.s32 %v810_v4, %v816_v8 }
  0xfe   :  { %v305_v20 = vshrl.u32 %v287_v55, %v303_v3  ;;  %v308_v21 = vadd.s32 127, %v307_v5  ;;  %v507_v44 = vclz %v581_v16  ;;  %v335_v53 = vand.u32 2147483647, %v820_v12 }
  0xff   :  { %v879_v31 = vmul.u32.u64.low %v832_v28, %v174_v34  ;;  %v880_v50 = vmul.u32.u64.high %v832_v28, %v174_v34, %v879_v31  ;;  %v345_v54 = vadd.s32 1, %v576_v37  ;;  %v324_v56 = vadd.s32 3, %v320_v7 }
 0x100   :  { %v306_v30 = vor.u32 %v305_v20, %v304_v14  ;;  %v309_v39 = vshll.u32 %v308_v21, 23  ;;  %v582_v32 = vadd.s32 4294967294, %v507_v44  ;;  %v182_v33 = vmul.u32 %v832_v28, %v166_v48 }
 0x101   :  { %v185_v61 = vadd.s32 1, %v874_v40  ;;  %vm184_vm6 = vc.u32 %v880_v50, %v873_v35  ;;  %vm346_vm7 = vcmp.gt.s32.totalorder %v345_v54, 0  ;;  %v525_v26 = vsub.s32 4, %v838_v42 }
 0x102   :  { %v310_v46 = vor.u32 4788187, %v309_v39  ;;  %vm583_vm5 = vcmp.lt.s32.totalorder %v582_v32, 0  ;;  %v313_v43 = vcvt.s32.f32 %v306_v30  ;;  %v347_v1 = vsel %vm346_vm7, %v345_v54, 0 }
 0x103   :  { %v510_v57 = vsel %vm583_vm5, 0, %v582_v32  ;;  %v186_v13 = vsel %vm184_vm6, %v185_v61, %v874_v40  ;;  %v349_v3 = vand.u32 31, %v347_v1  ;;  %vm441_vm8 = vcmp.lt.s32.totalorder %v731_v11, 0 }
 0x104   :  { %v311_v55 = vand.u32 2147483647, %v310_v46  ;;  %v511_v59 = vsub.s32 32, %v510_v57  ;;  %v515_v60 = vsub.s32 4294967266, %v510_v57  ;;  %v512_v63 = vshll.u32 %v857_v0, %v510_v57 }
 0x105   :  { %v187_v2 = vadd.s32 %v186_v13, %v182_v33  ;;  %vm897_vm9 = vcmp.le.f32.partialorder %v439_v15, 0.7853982  ;;  %v350_v14 = vsub.s32 32, %v349_v3  ;;  %v904_v17 = vand.u32 3, %v324_v56 }
 0x106   :  { %v314_v62 = vmul.f32 %v313_v43, %v311_v55  ;;  %v513_v4 = vshrl.u32 %v495_v52, %v511_v59  ;;  %v516_v8 = vadd.s32 127, %v515_v60  ;;  %v342_v20 = vand.u32 8388607, %v335_v53 }
 0x107   :  { %v188_v9 = vadd.s32 536870912, %v187_v2  ;;  %v526_v15 = vsel %vm441_vm8, %v525_v26, %v838_v42  ;;  %v353_v22 = vshrl.u32 %v673_v45, %v350_v14  ;;  %v356_v36 = vshrl.u32 %v674_v47, %v350_v14 }
 0x108   :  { %v315_v25 = vxor.u32 2147483648, %v314_v62  ;;  %v514_v28 = vor.u32 %v513_v4, %v512_v63  ;;  %v517_v5 = vshll.u32 %v516_v8, 23  ;;  %v348_v27 = vshrl.u32 %v347_v1, 5 }
 0x109   :  { %v911_v21 = vshrl.u32 %v188_v9, 30  ;;  %v352_v37 = vshll.u32 %v672_v41, %v349_v3  ;;  %v359_v30 = vshrl.u32 %v675_v49, %v350_v14  ;;  %v355_v7 = vshll.u32 %v673_v45, %v349_v3 }
 0x10a   :  { %v316_v0 = vsel %vm233_vm14, %v315_v25, %v314_v62  ;;  %v518_v18 = vor.u32 4788187, %v517_v5  ;;  %v521_v44 = vcvt.s32.f32 %v514_v28  ;;  %v361_v42 = vshll.u32 %v675_v49, %v349_v3 }
 0x10b   :  { %v319_v16 = vsel %vm847_vm15, %v728_v10, %v316_v0  ;;  %v190_v24 = vshll.u32 %v911_v21, 30  ;;  %v362_v38 = vshrl.u32 %v676_v51, %v350_v14  ;;  %v528_v32 = vsel %vm897_vm9, 0, %v526_v15 }
 0x10c   :  { %634 = vcosq.f32 %v319_v16  ;;  %v519_v23 = vand.u32 2147483647, %v518_v18  ;;  %v354_v40 = vor.u32 %v353_v22, %v352_v37  ;;  %v358_v46 = vshll.u32 %v674_v47, %v349_v3 }
 0x10d   :  { %636 = vsinq.f32 %v319_v16  ;;  %v923_v34 = vsub.s32 %v187_v2, %v190_v24  ;;  %v357_v31 = vor.u32 %v356_v36, %v355_v7  ;;  %v363_v52 = vor.u32 %v362_v38, %v361_v42 }
 0x10e   :  { %v522_v39 = vmul.f32 %v521_v44, %v519_v23  ;;  %v365_v54 = vshrl.u32 %v677_v58, %v350_v14  ;;  %v360_v45 = vor.u32 %v359_v30, %v358_v46  ;;  %v364_v49 = vshll.u32 %v676_v51, %v349_v3 }
 0x10f   :  { %v193_v55 = vsub.s32 0, %v923_v34  ;;  %vm330_vm10 = vcmp.eq.s32.totalorder %v904_v17, 2  ;;  %v532_v56 = vadd.s32 3, %v528_v32  ;;  %v343_v57 = vor.u32 8388608, %v342_v20 }
 0x110   :  { %v523_v48 = vxor.u32 2147483648, %v522_v39  ;;  %vm367_vm11 = vcmp.lt.s32.totalorder %v348_v27, 1  ;;  %vm327_vm12 = vcmp.eq.s32.totalorder %v904_v17, 0  ;;  %v366_v59 = vor.u32 %v365_v54, %v364_v49 }
 0x111   :  { %v569_v58 = vmin.u32 %v193_v55, %v923_v34  ;;  %vm370_vm13 = vcmp.lt.s32.totalorder %v348_v27, 4  ;;  %v351_v51 = vshrl.u32 %v672_v41, %v350_v14  ;;  %v375_v60 = vsel %vm367_vm11, %v354_v40, %v357_v31 }
 0x112   :  { %v524_v43 = vsel %vm441_vm8, %v523_v48, %v522_v39  ;;  %v376_v33 = vsel %vm370_vm13, %v363_v52, 920167782  ;;  %vm369_vm14 = vcmp.lt.s32.totalorder %v348_v27, 3  ;;  %v372_v62 = vsel %vm370_vm13, %v360_v45, 2102212464 }
 0x113   :  { %v527_v47 = vsel %vm897_vm9, %v731_v11, %v524_v43  ;;  %v195_v61 = vclz %v569_v58  ;;  %vm368_vm15 = vcmp.lt.s32.totalorder %v348_v27, 2  ;;  %v377_v63 = vsel %vm369_vm14, %v360_v45, %v376_v33 }
 0x114   :  { %638 = vcosq.f32 %v527_v47  ;;  %v379_v4 = vsel %vm367_vm11, %v357_v31, %v360_v45  ;;  %v383_v8 = vshll.u32 %v343_v57, 8  ;;  %v371_v1 = vsel %vm367_vm11, %v351_v51, %v354_v40 }
 0x115   :  { %640 = vsinq.f32 %v527_v47  ;;  %v570_v13 = vadd.s32 4294967294, %v195_v61  ;;  %v378_v25 = vsel %vm368_vm15, %v375_v60, %v377_v63  ;;  %v380_v41 = vsel %vm370_vm13, %v366_v59, 1326507024 }
 0x116   :  { %v373_v2 = vsel %vm369_vm14, %v357_v31, %v372_v62  ;;  %v381_v3 = vsel %vm369_vm14, %v363_v52, %v380_v41  ;;  %v945_v28 = vmul.u32.u64.low %v383_v8, %v378_v25  ;;  %v946_v5 = vmul.u32.u64.high %v383_v8, %v378_v25, %v945_v28 }
 0x117   :  { %v183_v9 = vadd.s32 %v873_v35, %v880_v50  ;;  %vm571_vm0 = vcmp.lt.s32.totalorder %v570_v13, 0  ;;  %v382_v14 = vsel %vm368_vm15, %v379_v4, %v381_v3  ;;  %v374_v36 = vsel %vm368_vm15, %v371_v1, %v373_v2 }
 0x118   :  { %v198_v18 = vsel %vm571_vm0, 0, %v570_v13  ;;  %v952_v20 = vmul.u32.u64.low %v383_v8, %v382_v14  ;;  %v953_v15 = vmul.u32.u64.high %v383_v8, %v382_v14, %v952_v20  ;;  %vm323_vm1 = vweird.f32 %v728_v10 }
 0x119   :  { %v635_v26 = vpop.eup %634  ;;  %v199_v23 = vsub.s32 32, %v198_v18  ;;  %v203_v44 = vsub.s32 4294967266, %v198_v18  ;;  %vm326_vm2 = vcmp.lt.s32.totalorder %v904_v17, 2  ;;  %v393_v50 = vadd.s32 1, %v946_v5 }
 0x11a   :  { %v637_v0 = vpop.eup %636  ;;  %v331_v6 = vxor.u32 2147483648, %v635_v26  ;;  %v200_v37 = vshll.u32 %v923_v34, %v198_v18  ;;  %v390_v42 = vmul.u32 %v383_v8, %v374_v36  ;;  %vm392_vm3 = vc.u32 %v953_v15, %v945_v28 }
 0x11b   :  { %v328_v16 = vxor.u32 2147483648, %v637_v0  ;;  %v201_v30 = vshrl.u32 %v183_v9, %v199_v23  ;;  %v204_v39 = vadd.s32 127, %v203_v44  ;;  %v533_v27 = vand.u32 3, %v532_v56 }
 0x11c   :  { %v332_v22 = vsel %vm330_vm10, %v331_v6, %v637_v0  ;;  %v394_v32 = vsel %vm392_vm3, %v393_v50, %v946_v5  ;;  %vm531_vm7 = vweird.f32 %v731_v11  ;;  %vm129_vm8 = vcmp.lt.s32.totalorder %v740_v19, 0 }
 0x11d   :  { %v329_v35 = vsel %vm327_vm12, %v635_v26, %v328_v16  ;;  %v202_v10 = vor.u32 %v201_v30, %v200_v37  ;;  %v205_v38 = vshll.u32 %v204_v39, 23  ;;  %v395_v17 = vadd.s32 %v394_v32, %v390_v42 }
 0x11e   :  { %v333_v24 = vsel %vm326_vm2, %v329_v35, %v332_v22  ;;  %vm538_vm4 = vcmp.eq.s32.totalorder %v533_v27, 2  ;;  %vm535_vm5 = vcmp.eq.s32.totalorder %v533_v27, 0  ;;  %vm534_vm6 = vcmp.lt.s32.totalorder %v533_v27, 2 }
 0x11f   :  { %v334_v7 = vsel %vm323_vm1, nan, %v333_v24  ;;  %v206_v46 = vor.u32 4788187, %v205_v38  ;;  %v396_v52 = vadd.s32 536870912, %v395_v17  ;;  %v209_v55 = vcvt.s32.f32 %v202_v10 }
 0x120   :  { %544 = vst [vmem:[#allocation2 + $0x8] sm:$0xff] %v334_v7  ;;  %v213_v51 = vsub.s32 4, %v911_v21  ;;  %vm128_vm9 = vcmp.le.f32.partialorder %v127_v29, 0.7853982  ;;  %v391_v41 = vadd.s32 %v945_v28, %v953_v15  ;;  %vm219_vm14 = vweird.f32 %v740_v19 }
 0x121   :  { %v639_v40 = vpop.eup %638  ;;  %v207_v54 = vand.u32 2147483647, %v206_v46  ;;  %v397_v49 = vshrl.u32 %v396_v52, 30  ;;  %vm337_vm15 = vcmp.lt.s32.totalorder %v820_v12, 0  ;;  %vm336_vm0 = vcmp.le.f32.partialorder %v335_v53, 0.7853982 }
 0x122   :  { %v641_v48 = vpop.eup %640  ;;  %v539_v31 = vxor.u32 2147483648, %v639_v40  ;;  %v214_v11 = vsel %vm129_vm8, %v213_v51, %v911_v21 }
 0x123   :  { %v536_v34 = vxor.u32 2147483648, %v641_v48  ;;  %v210_v56 = vmul.f32 %v209_v55, %v207_v54  ;;  %v398_v47 = vshll.u32 %v397_v49, 30  ;;  %v216_v8 = vsel %vm128_vm9, 0, %v214_v11 }
 0x124   :  { %v540_v45 = vsel %vm538_vm4, %v539_v31, %v641_v48  ;;  %v220_v1 = vadd.s32 3, %v216_v8  ;;  %v421_v24 = vsub.s32 4, %v397_v49  ;;  %vm427_vm4 = vweird.f32 %v820_v12 }
 0x125   :  { %v537_v43 = vsel %vm535_vm5, %v639_v40, %v536_v34  ;;  %v211_v59 = vxor.u32 2147483648, %v210_v56  ;;  %v399_v60 = vsub.s32 %v395_v17, %v398_v47 }
 0x126   :  { %v541_v57 = vsel %vm534_vm6, %v537_v43, %v540_v45  ;;  %v221_v2 = vand.u32 3, %v220_v1  ;;  %v422_v39 = vsel %vm337_vm15, %v421_v24, %v397_v49 }
 0x127   :  { %v542_v58 = vsel %vm531_vm7, nan, %v541_v57  ;;  %v212_v33 = vsel %vm129_vm8, %v211_v59, %v210_v56  ;;  %v401_v62 = vsub.s32 0, %v399_v60  ;;  %v424_v7 = vsel %vm336_vm0, 0, %v422_v39 }
 0x128   :  { %546 = vst [vmem:[#allocation2 + $0x18] sm:$0xff] %v542_v58  ;;  %v215_v61 = vsel %vm128_vm9, %v740_v19, %v212_v33  ;;  %vm226_vm11 = vcmp.eq.s32.totalorder %v221_v2, 2  ;;  %vm223_vm12 = vcmp.eq.s32.totalorder %v221_v2, 0  ;;  %vm222_vm13 = vcmp.lt.s32.totalorder %v221_v2, 2 }
 0x129   :  { %642 = vcosq.f32 %v215_v61  ;;  %v577_v63 = vmin.u32 %v401_v62, %v399_v60  ;;  %v428_v42 = vadd.s32 3, %v424_v7 }
 0x12a   :  { %644 = vsinq.f32 %v215_v61 }
 0x12b   :  { %v403_v4 = vclz %v577_v63  ;;  %v429_v19 = vand.u32 3, %v428_v42 }
 0x12d   :  { %v578_v13 = vadd.s32 4294967294, %v403_v4  ;;  %vm434_vm1 = vcmp.eq.s32.totalorder %v429_v19, 2  ;;  %vm431_vm2 = vcmp.eq.s32.totalorder %v429_v19, 0  ;;  %vm430_vm3 = vcmp.lt.s32.totalorder %v429_v19, 2 }
 0x12f   :  { %vm579_vm10 = vcmp.lt.s32.totalorder %v578_v13, 0 }
 0x130   :  { %v406_v25 = vsel %vm579_vm10, 0, %v578_v13 }
 0x131   :  { %v407_v26 = vsub.s32 32, %v406_v25  ;;  %v411_v29 = vsub.s32 4294967266, %v406_v25  ;;  %v408_v3 = vshll.u32 %v399_v60, %v406_v25 }
 0x133   :  { %v409_v5 = vshrl.u32 %v391_v41, %v407_v26  ;;  %v412_v0 = vadd.s32 127, %v411_v29 }
 0x135   :  { %v410_v9 = vor.u32 %v409_v5, %v408_v3  ;;  %v413_v21 = vshll.u32 %v412_v0, 23 }
 0x136   :  { %v643_v6 = vpop.eup %642 }
 0x137   :  { %v645_v14 = vpop.eup %644  ;;  %v227_v16 = vxor.u32 2147483648, %v643_v6  ;;  %v414_v20 = vor.u32 4788187, %v413_v21  ;;  %v417_v28 = vcvt.s32.f32 %v410_v9 }
 0x138   :  { %v224_v18 = vxor.u32 2147483648, %v645_v14 }
 0x139   :  { %v228_v22 = vsel %vm226_vm11, %v227_v16, %v645_v14  ;;  %v415_v44 = vand.u32 2147483647, %v414_v20 }
 0x13a   :  { %v225_v23 = vsel %vm223_vm12, %v643_v6, %v224_v18 }
 0x13b   :  { %v229_v15 = vsel %vm222_vm13, %v225_v23, %v228_v22  ;;  %v418_v35 = vmul.f32 %v417_v28, %v415_v44 }
 0x13c   :  { %v230_v36 = vsel %vm219_vm14, nan, %v229_v15 }
 0x13d   :  { %543 = vst [vmem:[#allocation2] sm:$0xff] %v230_v36  ;;  %v419_v50 = vxor.u32 2147483648, %v418_v35 }
 0x13f   :  { %v420_v37 = vsel %vm337_vm15, %v419_v50, %v418_v35 }
 0x140   :  { %v423_v30 = vsel %vm336_vm0, %v820_v12, %v420_v37 }
 0x141   :  { %646 = vcosq.f32 %v423_v30 }
 0x142   :  { %648 = vsinq.f32 %v423_v30 }
 0x14e   :  { %v647_v27 = vpop.eup %646 }
 0x14f   :  { %v649_v10 = vpop.eup %648  ;;  %v435_v38 = vxor.u32 2147483648, %v647_v27 }
 0x150   :  { %v432_v32 = vxor.u32 2147483648, %v649_v10 }
 0x151   :  { %v436_v17 = vsel %vm434_vm1, %v435_v38, %v649_v10 }
 0x152   :  { %v433_v53 = vsel %vm431_vm2, %v647_v27, %v432_v32 }
 0x153   :  { %v437_v40 = vsel %vm430_vm3, %v433_v53, %v436_v17 }
 0x154   :  { %v438_v46 = vsel %vm427_vm4, nan, %v437_v40 }
 0x155   :  { %545 = vst [vmem:[#allocation2 + $0x10] sm:$0xff] %v438_v46 }
 0x156   :  { %661 = shalt.err (!%p658_p4)
}
 0x157   :  { %s679_s28 = smov 128   ;;  %s680_s29 = smov 8  }
 0x158   :  { %558 = dma.vmem_to_hbm [thread:$0]  %s553_s2, 512, %s988_s3, [#allocation3], %s679_s28, %s679_s28, %s680_s29  }
 0x159   :  { %670 = dma.done.wait [#allocation3], 512  }
 0x15a   :  { %671 = vsyncadd [#allocation3], 4294966784 }
 0x15b   :  { %562 = vsyncpa [#allocation3], 1 }

</bundles_post_ra>
